<compile_context>
chip_gen: v5e
topology: v5e:2x2
jax: 0.10.0
libtpu: 0.0.40
codegen_flags: <defaults>
</compile_context>

<pallas_src>
import jax
import jax.numpy as jnp
from jax.experimental import pallas as pl
from jax.experimental.pallas import tpu as pltpu

IN_SIZE = 59
HIDDEN_SIZE = 256
OUT_SIZE = 18

# Static padded / fused kernel-side sizes.
IN_PAD = 64                       # 59 -> 64: sublane-aligned K for the x matmul
OUT_PAD = 128                     # 18 -> 128: lane-dense output block
N_FUSED = HIDDEN_SIZE + OUT_PAD   # 384: fused slab columns = [hidden | out_pad]
N_REAL = HIDDEN_SIZE + OUT_SIZE   # 274: real (unpadded) fused columns


def _rnn_seq_kernel(x_ref, h0_ref, wx_ref, wh_ref, b_ref,
                    out_ref, hfin_ref, h_sc):
    """One timestep per grid point. Weights are VMEM-resident (constant block
    index); the hidden state is carried in VMEM scratch `h_sc` across steps."""
    t = pl.program_id(0)

    @pl.when(t == 0)
    def _():
        h_sc[...] = h0_ref[...].astype(jnp.float32)

    x = x_ref[0]                          # [B, IN_PAD]  bf16 (cast once in wrapper)
    h = h_sc[...]                         # [B, HIDDEN]  f32 (carried state)

    # Fused slab:  pre = cat(x, h) @ [W_h | W_o] + [b_h | b_o]
    #            = x @ Wx_all + h @ Wh_all + b_all        -> [B, 384] f32
    pre = (jnp.dot(x, wx_ref[...], preferred_element_type=jnp.float32)
           + jnp.dot(h.astype(wh_ref.dtype), wh_ref[...],
                     preferred_element_type=jnp.float32)
           + b_ref[...])

    # Column 256 is a 128-aligned split point: no layout copies.
    h_new = jax.nn.sigmoid(pre[:, :HIDDEN_SIZE])          # f32 (v5e-safe EUP/VPU path)
    h_sc[...] = h_new
    out_ref[0] = pre[:, HIDDEN_SIZE:].astype(out_ref.dtype)   # lane-dense [B, 128]
    hfin_ref[...] = h_new.astype(hfin_ref.dtype)               # resident; flushed at end


def prepare_params(pt_params):
    """One-time conversion of PyTorch-layout Linear weights into fused, padded,
    pre-transposed, bf16 kernel weights. Call once at init, NOT per forward.

    NOTE: output columns 18..127 of the fused slab (and the matching bias
    entries) MUST remain exactly zero — the wrapper's final slice relies on it.
    """
    w_h = pt_params["w_in2hidden"].T          # [in+hid, hid]
    w_o = pt_params["w_in2output"].T          # [in+hid, out]
    # Split the concat dimension (x part / h part) and fuse output columns.
    wx = jnp.concatenate([w_h[:IN_SIZE], w_o[:IN_SIZE]], axis=1)   # [in,  hid+out]
    wh = jnp.concatenate([w_h[IN_SIZE:], w_o[IN_SIZE:]], axis=1)   # [hid, hid+out]
    b = jnp.concatenate([pt_params["b_in2hidden"], pt_params["b_in2output"]])
    # Zero-pad: x-side K 59 -> 64, fused N 274 -> 384.
    wx = jnp.pad(wx, ((0, IN_PAD - IN_SIZE), (0, N_FUSED - N_REAL)))
    wh = jnp.pad(wh, ((0, 0), (0, N_FUSED - N_REAL)))
    b = jnp.pad(b, (0, N_FUSED - N_REAL)).reshape(1, N_FUSED)
    # bf16 weights halve HBM weight traffic; accumulation stays f32 in-kernel.
    return {"wx": wx.astype(jnp.bfloat16),
            "wh": wh.astype(jnp.bfloat16),
            "b": b.astype(jnp.float32)}


@jax.jit
def simple_rnn_sequence(x_seq, h0, wx, wh, b):
    """Run the RNN over a whole sequence in ONE pallas_call.

    x_seq: [T, B, IN_SIZE] f32, h0: [B, HIDDEN_SIZE] f32; wx/wh/b from prepare_params().
    Returns (out_seq [T, B, OUT_SIZE] f32, h_final [B, HIDDEN_SIZE] f32)."""
    T, B, _ = x_seq.shape
    # One pad + bf16 cast for the WHOLE sequence (fuses to one XLA op, amortized
    # over T steps — not a per-step wrapper op).
    x_seq_pad = jnp.pad(
        x_seq, ((0, 0), (0, 0), (0, IN_PAD - IN_SIZE))).astype(jnp.bfloat16)

    out_seq_pad, h_final = pl.pallas_call(
        _rnn_seq_kernel,
        out_shape=(
            jax.ShapeDtypeStruct((T, B, OUT_PAD), jnp.float32),     # lane-dense slab
            jax.ShapeDtypeStruct((B, HIDDEN_SIZE), jnp.float32),
        ),
        grid_spec=pltpu.PrefetchScalarGridSpec(
            num_scalar_prefetch=0,
            grid=(T,),
            in_specs=[
                pl.BlockSpec((1, B, IN_PAD), lambda t: (t, 0, 0)),        # per-step x
                pl.BlockSpec((B, HIDDEN_SIZE), lambda t: (0, 0)),         # h0 (once)
                pl.BlockSpec((IN_PAD, N_FUSED), lambda t: (0, 0)),        # wx (resident)
                pl.BlockSpec((HIDDEN_SIZE, N_FUSED), lambda t: (0, 0)),   # wh (resident)
                pl.BlockSpec((1, N_FUSED), lambda t: (0, 0)),             # b  (resident)
            ],
            out_specs=(
                pl.BlockSpec((1, B, OUT_PAD), lambda t: (t, 0, 0)),       # per-step out
                pl.BlockSpec((B, HIDDEN_SIZE), lambda t: (0, 0)),         # final hidden
            ),
            scratch_shapes=[pltpu.VMEM((B, HIDDEN_SIZE), jnp.float32)],   # carried h
        ),
        compiler_params=pltpu.CompilerParams(
            dimension_semantics=("arbitrary",)),   # sequential recurrence over T
    )(x_seq_pad, h0, wx, wh, b)

    # Single slice for the whole sequence; padded cols 18..127 are exact zeros.
    return out_seq_pad[..., :OUT_SIZE], h_final


def simple_rnn_step(x, hidden_state, kernel_params):
    """Mirrors SimpleRNN.forward for a single step (implemented as T=1 of the
    fused sequence kernel)."""
    B = x.shape[0]
    if hidden_state is None:
        # PyTorch makes zeros(1, hidden); broadcast explicitly to (B, hidden) so
        # batch semantics are well defined for B > 1.
        hidden_state = jnp.zeros((B, HIDDEN_SIZE), dtype=jnp.float32)
    out_seq, h = simple_rnn_sequence(
        x[None], hidden_state,
        kernel_params["wx"], kernel_params["wh"], kernel_params["b"])
    return out_seq[0], h


def init_params(key):
    """Deterministic PyTorch-layout parameter init (kaiming-uniform-style, nn.Linear)."""
    k1, k2, k3, k4 = jax.random.split(key, 4)
    fan_in = IN_SIZE + HIDDEN_SIZE
    bound = 1.0 / jnp.sqrt(fan_in)
    return {
        "w_in2hidden": jax.random.uniform(
            k1, (HIDDEN_SIZE, fan_in), jnp.float32, -bound, bound),
        "b_in2hidden": jax.random.uniform(
            k2, (HIDDEN_SIZE,), jnp.float32, -bound, bound),
        "w_in2output": jax.random.uniform(
            k3, (OUT_SIZE, fan_in), jnp.float32, -bound, bound),
        "b_in2output": jax.random.uniform(
            k4, (OUT_SIZE,), jnp.float32, -bound, bound),
    }


if __name__ == "__main__":
    key = jax.random.PRNGKey(0)
    kp, kx, kh = jax.random.split(key, 3)

    pt_params = init_params(kp)
    kernel_params = prepare_params(pt_params)   # one-time weight prep

    B, T = 8, 16
    x_seq = jax.random.normal(kx, (T, B, IN_SIZE), dtype=jnp.float32)
    h0 = jax.random.normal(kh, (B, HIDDEN_SIZE), dtype=jnp.float32)

    out_seq, h_final = simple_rnn_sequence(
        x_seq, h0, kernel_params["wx"], kernel_params["wh"], kernel_params["b"])
    jax.block_until_ready((out_seq, h_final))

    # Reference: step-by-step PyTorch-equivalent forward in plain f32 JAX.
    w_h, b_h = pt_params["w_in2hidden"], pt_params["b_in2hidden"]
    w_o, b_o = pt_params["w_in2output"], pt_params["b_in2output"]
    h_ref = h0
    ref_outs = []
    for t in range(T):
        combined = jnp.concatenate([x_seq[t], h_ref], axis=1)
        ref_outs.append(combined @ w_o.T + b_o)
        h_ref = jax.nn.sigmoid(combined @ w_h.T + b_h)
    ref_out_seq = jnp.stack(ref_outs)

    assert out_seq.shape == (T, B, OUT_SIZE) and h_final.shape == (B, HIDDEN_SIZE)
    # bf16 weights / inputs -> loosened tolerance (accumulation remains f32).
    assert jnp.allclose(out_seq, ref_out_seq, atol=2e-2, rtol=2e-2)
    assert jnp.allclose(h_final, h_ref, atol=2e-2, rtol=2e-2)

    # Single-step API parity with SimpleRNN.forward (T=1 path).
    out1, h1 = simple_rnn_step(x_seq[0], h0, kernel_params)
    jax.block_until_ready((out1, h1))
    assert out1.shape == (B, OUT_SIZE) and h1.shape == (B, HIDDEN_SIZE)
    assert jnp.allclose(out1, ref_out_seq[0], atol=2e-2, rtol=2e-2)

    print("KERNEL_OK")
</pallas_src>

<mosaic_0001>
module attributes {stable_mosaic.version = 11 : i64} {
  func.func @_rnn_seq_kernel(%arg0: i32, %arg1: memref<1x8x64xbf16, #tpu.memory_space<vmem>>, %arg2: memref<8x256xf32, #tpu.memory_space<vmem>>, %arg3: memref<64x384xbf16, #tpu.memory_space<vmem>>, %arg4: memref<256x384xbf16, #tpu.memory_space<vmem>>, %arg5: memref<1x384xf32, #tpu.memory_space<vmem>>, %arg6: memref<1x8x128xf32, #tpu.memory_space<vmem>>, %arg7: memref<8x256xf32, #tpu.memory_space<vmem>>, %arg8: memref<8x256xf32, #tpu.memory_space<vmem>>) attributes {dimension_semantics = [#tpu.dimension_semantics<arbitrary>], iteration_bounds = array<i64: 16>, scalar_prefetch = 0 : i64, scratch_operands = 1 : i64, tpu.core_type = #tpu.core_type<tc>, window_params = [{transform_indices = @transform_0, window_bounds = array<i64: 1, 8, 64>}, {pipeline_mode = #tpu.pipeline_mode<synchronous>, transform_indices = @transform_1, window_bounds = array<i64: 8, 256>}, {pipeline_mode = #tpu.pipeline_mode<synchronous>, transform_indices = @transform_2, window_bounds = array<i64: 64, 384>}, {pipeline_mode = #tpu.pipeline_mode<synchronous>, transform_indices = @transform_3, window_bounds = array<i64: 256, 384>}, {pipeline_mode = #tpu.pipeline_mode<synchronous>, transform_indices = @transform_4, window_bounds = array<i64: 1, 384>}, {transform_indices = @transform_5, window_bounds = array<i64: 1, 8, 128>}, {pipeline_mode = #tpu.pipeline_mode<synchronous>, transform_indices = @transform_6, window_bounds = array<i64: 8, 256>}]} {
    %c0_i32 = arith.constant 0 : i32
    %0 = arith.cmpi eq, %arg0, %c0_i32 : i32
    %1 = arith.extui %0 : i1 to i32
    %c0_i32_0 = arith.constant 0 : i32
    %2 = arith.cmpi ne, %1, %c0_i32_0 : i32
    scf.if %2 {
      %c0_20 = arith.constant 0 : index
      %c0_21 = arith.constant 0 : index
      %27 = vector.load %arg2[%c0_20, %c0_21] : memref<8x256xf32, #tpu.memory_space<vmem>>, vector<8x256xf32>
      %c0_22 = arith.constant 0 : index
      %c0_23 = arith.constant 0 : index
      %28 = vector.load %arg8[%c0_22, %c0_23] : memref<8x256xf32, #tpu.memory_space<vmem>>, vector<8x256xf32>
      tpu.vector_store %arg8[%c0_22, %c0_23], %27 {strides = array<i32>} : memref<8x256xf32, #tpu.memory_space<vmem>>, vector<8x256xf32>,
    } else {
    }
    %c0 = arith.constant 0 : index
    %c0_1 = arith.constant 0 : index
    %c0_2 = arith.constant 0 : index
    %3 = vector.load %arg1[%c0, %c0_1, %c0_2] : memref<1x8x64xbf16, #tpu.memory_space<vmem>>, vector<1x8x64xbf16>
    %4 = vector.shape_cast %3 : vector<1x8x64xbf16> to vector<8x64xbf16>
    %c0_3 = arith.constant 0 : index
    %c0_4 = arith.constant 0 : index
    %5 = vector.load %arg8[%c0_3, %c0_4] : memref<8x256xf32, #tpu.memory_space<vmem>>, vector<8x256xf32>
    %c0_5 = arith.constant 0 : index
    %c0_6 = arith.constant 0 : index
    %6 = vector.load %arg3[%c0_5, %c0_6] : memref<64x384xbf16, #tpu.memory_space<vmem>>, vector<64x384xbf16>
    %cst = arith.constant dense<0.000000e+00> : vector<8x384xf32>
    %7 = tpu.matmul %4, %6, %cst {dimension_numbers = #tpu.dot_dimension_numbers<[1], [0], [0], [1], [0, 0, 1, 1], [], []>} : vector<8x64xbf16>, vector<64x384xbf16>, vector<8x384xf32> -> vector<8x384xf32>
    %8 = arith.truncf %5 : vector<8x256xf32> to vector<8x256xbf16>
    %c0_7 = arith.constant 0 : index
    %c0_8 = arith.constant 0 : index
    %9 = vector.load %arg4[%c0_7, %c0_8] : memref<256x384xbf16, #tpu.memory_space<vmem>>, vector<256x384xbf16>
    %cst_9 = arith.constant dense<0.000000e+00> : vector<8x384xf32>
    %10 = tpu.matmul %8, %9, %cst_9 {dimension_numbers = #tpu.dot_dimension_numbers<[1], [0], [0], [1], [0, 0, 1, 1], [], []>} : vector<8x256xbf16>, vector<256x384xbf16>, vector<8x384xf32> -> vector<8x384xf32>
    %11 = arith.addf %7, %10 : vector<8x384xf32>
    %c0_10 = arith.constant 0 : index
    %c0_11 = arith.constant 0 : index
    %12 = vector.load %arg5[%c0_10, %c0_11] : memref<1x384xf32, #tpu.memory_space<vmem>>, vector<1x384xf32>
    %13 = vector.broadcast %12 : vector<1x384xf32> to vector<8x384xf32>
    %14 = arith.addf %11, %13 : vector<8x384xf32>
    %15 = vector.extract_strided_slice %14 {offsets = [0, 0], sizes = [8, 256], strides = [1, 1]} : vector<8x384xf32> to vector<8x256xf32>
    %16 = arith.negf %15 : vector<8x256xf32>
    %17 = math.exp %16 : vector<8x256xf32>
    %cst_12 = arith.constant 1.000000e+00 : f32
    %18 = vector.broadcast %cst_12 : f32 to vector<8x256xf32>
    %19 = arith.addf %18, %17 : vector<8x256xf32>
    %20 = arith.divf %18, %19 : vector<8x256xf32>
    %c0_13 = arith.constant 0 : index
    %c0_14 = arith.constant 0 : index
    %21 = vector.load %arg8[%c0_13, %c0_14] : memref<8x256xf32, #tpu.memory_space<vmem>>, vector<8x256xf32>
    tpu.vector_store %arg8[%c0_13, %c0_14], %20 {strides = array<i32>} : memref<8x256xf32, #tpu.memory_space<vmem>>, vector<8x256xf32>,
    %22 = vector.extract_strided_slice %14 {offsets = [0, 256], sizes = [8, 128], strides = [1, 1]} : vector<8x384xf32> to vector<8x128xf32>
    %c0_15 = arith.constant 0 : index
    %c0_16 = arith.constant 0 : index
    %c0_17 = arith.constant 0 : index
    %23 = vector.load %arg6[%c0_15, %c0_16, %c0_17] : memref<1x8x128xf32, #tpu.memory_space<vmem>>, vector<1x8x128xf32>
    %24 = vector.shape_cast %23 : vector<1x8x128xf32> to vector<8x128xf32>
    %25 = vector.shape_cast %22 : vector<8x128xf32> to vector<1x8x128xf32>
    tpu.vector_store %arg6[%c0_15, %c0_16, %c0_17], %25 {strides = array<i32>} : memref<1x8x128xf32, #tpu.memory_space<vmem>>, vector<1x8x128xf32>,
    %c0_18 = arith.constant 0 : index
    %c0_19 = arith.constant 0 : index
    %26 = vector.load %arg7[%c0_18, %c0_19] : memref<8x256xf32, #tpu.memory_space<vmem>>, vector<8x256xf32>
    tpu.vector_store %arg7[%c0_18, %c0_19], %20 {strides = array<i32>} : memref<8x256xf32, #tpu.memory_space<vmem>>, vector<8x256xf32>,
    return
  }
  func.func @transform_0(%arg0: i32) -> (i32, i32, i32) {
    %c0_i32 = arith.constant 0 : i32
    %c0_i32_0 = arith.constant 0 : i32
    %c0_i32_1 = arith.constant 0 : i32
    return %arg0, %c0_i32, %c0_i32_0 : i32, i32, i32
  }
  func.func @transform_1(%arg0: i32) -> (i32, i32) {
    %c0_i32 = arith.constant 0 : i32
    %c0_i32_0 = arith.constant 0 : i32
    %c0_i32_1 = arith.constant 0 : i32
    return %c0_i32, %c0_i32_0 : i32, i32
  }
  func.func @transform_2(%arg0: i32) -> (i32, i32) {
    %c0_i32 = arith.constant 0 : i32
    %c0_i32_0 = arith.constant 0 : i32
    %c0_i32_1 = arith.constant 0 : i32
    return %c0_i32, %c0_i32_0 : i32, i32
  }
  func.func @transform_3(%arg0: i32) -> (i32, i32) {
    %c0_i32 = arith.constant 0 : i32
    %c0_i32_0 = arith.constant 0 : i32
    %c0_i32_1 = arith.constant 0 : i32
    return %c0_i32, %c0_i32_0 : i32, i32
  }
  func.func @transform_4(%arg0: i32) -> (i32, i32) {
    %c0_i32 = arith.constant 0 : i32
    %c0_i32_0 = arith.constant 0 : i32
    %c0_i32_1 = arith.constant 0 : i32
    return %c0_i32, %c0_i32_0 : i32, i32
  }
  func.func @transform_5(%arg0: i32) -> (i32, i32, i32) {
    %c0_i32 = arith.constant 0 : i32
    %c0_i32_0 = arith.constant 0 : i32
    %c0_i32_1 = arith.constant 0 : i32
    return %arg0, %c0_i32, %c0_i32_0 : i32, i32, i32
  }
  func.func @transform_6(%arg0: i32) -> (i32, i32) {
    %c0_i32 = arith.constant 0 : i32
    %c0_i32_0 = arith.constant 0 : i32
    %c0_i32_1 = arith.constant 0 : i32
    return %c0_i32, %c0_i32_0 : i32, i32
  }
}

</mosaic_0001>

<bundles_post_ra>
// kernel: simple_rnn_sequence.1
= control target key start
LH: loop header
LB: loop body
LE: loop exit
PB: predicated region body
PF: predicated region fallthrough
CT: control target
= control target key end

     0   :  { %12 = vsyncpa [#allocation4], 0  ;;  %s1736_s0 = inlined_call_operand.vmem [shape: bf16[16,8,64], index: 0, kind: input, shape index: {}]   ;;  %s1737_s1 = inlined_call_operand.vmem [shape: f32[8,256], index: 1, kind: input, shape index: {}]   ;;  %s1738_s2 = inlined_call_operand.vmem [shape: bf16[64,384], index: 2, kind: input, shape index: {}]   ;;  %s1739_s3 = inlined_call_operand.hbm [shape: bf16[256,384], index: 3, kind: input, shape index: {}]   ;;  %s1740_s4 = inlined_call_operand.vmem [shape: f32[1,384], index: 4, kind: input, shape index: {}]   ;;  %s1741_s5 = inlined_call_operand.hbm [shape: f32[16,8,128], index: 5, kind: output, shape index: {0}]   ;;  %s1742_s6 = inlined_call_operand.hbm [shape: f32[8,256], index: 6, kind: output, shape index: {1}]  }
   0x1   :  { %13 = vsyncpa [#allocation5], 0 }
   0x2   :  { %15 = vsyncpa [#allocation5 + $0x1], 0 }
   0x3   :  { %16 = vsyncpa [#allocation8], 0  ;;  %s1519_s21 = smov 0   ;;  %s1521_s22 = smov 0  }
   0x4   :  { %s1523_s23 = smov 0   ;;  %s1525_s24 = smov 0  }
   0x5 LB: > { %s1540_s25 = sadd.s32 4294967295, %s1478_s24   ;;  %s963_s26 = sadd.s32 4294967294, %s1478_s24   ;;  %s1478_s24 = sphi %s1525_s24, %s1748_s24   ;;  %s1474_s23 = sphi %s1523_s23, %s1747_s23   ;;  %s1470_s22 = sphi %s1521_s22, %s1746_s22   ;;  %s1466_s21 = sphi %s1519_s21, %s1745_s21  }
   0x6   : > { %s1544_s27 = sadd.s32 1, %s1478_s24   ;;  %s139_s28 = sadd.s32 1, %s1474_s23 }
   0x7   : > { %s136_s29 = ssub.s32 %s1478_s24, %s1544_s27  ;;  %p149_p0 = scmp.ne.s32.totalorder %s1474_s23, %s1470_s22 }
   0x8   : > { %p137_p1 = scmp.eq.s32.totalorder %s136_s29, 0  ;;  %p150_p2 = scmp.eq.s32.totalorder %s1540_s25, 15 }
   0x9   : > { %p155_p3 = scmp.ne.s32.totalorder %s1470_s22, %s1466_s21  ;;  %p156_p4 = scmp.eq.s32.totalorder %s963_s26, 15 }
   0xa   : > { %s1555_s30 = scalar_select %p137_p1, %s1474_s23, %s139_s28  }
   0xb   : > { %p1559_p5 = por %p150_p2, %p149_p0  ;;  %p1563_p6 = por %p156_p4, %p155_p3 }
   0xc   : > { %p964_p7 = scmp.ge.s32.totalorder %s1478_s24, 1  ;;  %p184_p8 = scmp.lt.s32.totalorder %s1478_s24, 17 }
   0xd   : > { %p965_p9 = scmp.ne.s32.totalorder %s1540_s25, 0  ;;  %p1301_p10 = scmp.eq.s32.totalorder %s1540_s25, 0 }
   0xe   : > { %p185_p11 = pnand %p964_p7, %p184_p8  ;;  %s201_s11 = sshll.u32 %s1739_s3, 4  ;;  %s202_s11 = int_to_ptr.hbm [resolvable:$true] %s201_s11 }
   0xf   : > { %s1480_s12 = smov [#allocation3]   ;;  %s1481_s14 = smov 192  }
  0x10   : > { %p1293_p12 = pneg %p185_p11  ;;  %s203_s13 = sshll.u32 %s1480_s12, 4  ;;  %s204_s13 = int_to_ptr.vmem [resolvable:$true] %s203_s13 }
  0x11   : > { %s1482_s15 = smov 12   ;;  %229 = sbr.rel (%p185_p11) target bundleno = 256 (0x100), region = 40 }
  0x12   : > { %p1294_p13 = pnand %p1301_p10, %p1293_p12 }
  0x14   : > { %1296 = dma.hbm_to_vmem [thread:$0]  (!%p1294_p13), %s202_s11, 6144, %s204_s13, [#allocation4], %s1481_s14, %s1481_s14, %s1482_s15  }
  0x16   : > { %1453 = dma.done.wait (%p1301_p10), [#allocation4], 6144  }
  0x17   : > { %1455 = vsyncadd (%p1301_p10), [#allocation4], 4294961152  ;;  %s254_s16 = sand.u32 1, %s1470_s22   ;;  %p259_p0 = scmp.lt.s32.totalorder %s1540_s25, 15 }
  0x18   : > { %s1584_s17 = sshll.u32 %s254_s16, 3  ;;  %267 = sbr.rel (%p965_p9) target bundleno = 32 (0x20), region = 48 }
  0x19   : > { %s260_s18 = scalar_select %p259_p0, %s1540_s25, 15 }
  0x1a   : > { %s256_s29 = scalar_lea.vmem [#allocation6], %s1584_s17 }
  0x1b   : > { %s970_s19 = sshll.u32 %s260_s18, 2 }
  0x1c   : > { %s1590_s28 = scalar_lea.vmem %s1736_s0, %s970_s19 }
  0x1d   : > { %v268_v0 = vld [vmem:[%s1737_s1] sm:$0xff]  ;;  %v269_v1 = vld [vmem:[%s1737_s1 + $0x8] sm:$0xff] }
  0x1e   : > { %270 = vst [vmem:[#allocation2] sm:$0xff] %v268_v0 }
  0x1f   : > { %271 = vst [vmem:[#allocation2 + $0x8] sm:$0xff] %v269_v1 }
  0x20 PF: > { %v1256_v2 = vld [vmem:[#allocation3 + $0xac] sm:$0xf]  ;;  %v1060_v3 = vld [vmem:[#allocation3 + $0xb4] sm:$0xf0]  ;;  %v1253_v7 = vld [vmem:[#allocation3 + $0x94] sm:$0xf] }
  0x21   : > { %v1280_v4 = vld [vmem:[#allocation3 + $0x16c] sm:$0xf]  ;;  %v1063_v5 = vor.u32 %v1256_v2, %v1060_v3  ;;  %v1156_v6 = vld [vmem:[#allocation3 + $0x174] sm:$0xf0]  ;;  %v1048_v8 = vld [vmem:[#allocation3 + $0x9c] sm:$0xf0] }
  0x22   : > { %v1159_v9 = vor.u32 %v1280_v4, %v1156_v6  ;;  %v1277_v10 = vld [vmem:[#allocation3 + $0x154] sm:$0xf]  ;;  %v1144_v11 = vld [vmem:[#allocation3 + $0x15c] sm:$0xf0]  ;;  %v1051_v12 = vor.u32 %v1253_v7, %v1048_v8  ;;  %v1250_v13 = vld [vmem:[#allocation3 + $0x7c] sm:$0xf] }
  0x23   : > { %639 = vmatpush.bf16.msra.mxu2 %v1063_v5  ;;  %v1036_v14 = vld [vmem:[#allocation3 + $0x84] sm:$0xf0]  ;;  %v1147_v15 = vor.u32 %v1277_v10, %v1144_v11  ;;  %v1257_v17 = vld [vmem:[#allocation3 + $0xb0] sm:$0xf0]  ;;  %v1274_v19 = vld [vmem:[#allocation3 + $0x13c] sm:$0xf] }
  0x24   : > { %652 = vmatpush.bf16.msra.mxu3 %v1159_v9  ;;  %v1058_v16 = vld [vmem:[#allocation3 + $0xa8] sm:$0xf]  ;;  %v1281_v22 = vld [vmem:[#allocation3 + $0x170] sm:$0xf0]  ;;  %v1046_v24 = vld [vmem:[#allocation3 + $0x90] sm:$0xf]  ;;  %v1039_v25 = vor.u32 %v1250_v13, %v1036_v14 }
  0x25   : > { %v1154_v18 = vld [vmem:[#allocation3 + $0x168] sm:$0xf]  ;;  %v1059_v21 = vor.u32 %v1257_v17, %v1058_v16  ;;  %v1254_v26 = vld [vmem:[#allocation3 + $0x98] sm:$0xf0]  ;;  %v1142_v27 = vld [vmem:[#allocation3 + $0x150] sm:$0xf] }
  0x26   : > { %v1132_v20 = vld [vmem:[#allocation3 + $0x144] sm:$0xf0]  ;;  %v1155_v23 = vor.u32 %v1281_v22, %v1154_v18  ;;  %v1278_v28 = vld [vmem:[#allocation3 + $0x158] sm:$0xf0]  ;;  %v1247_v30 = vld [vmem:[#allocation3 + $0x64] sm:$0xf]  ;;  %v1047_v33 = vor.u32 %v1254_v26, %v1046_v24 }
  0x27   : > { %640 = vmatpush.bf16.msra.mxu2 %v1051_v12  ;;  %613 = vmatpush.bf16.msra.mxu0 %v1059_v21  ;;  %v1135_v29 = vor.u32 %v1274_v19, %v1132_v20  ;;  %v1024_v31 = vld [vmem:[#allocation3 + $0x6c] sm:$0xf0]  ;;  %v1271_v32 = vld [vmem:[#allocation3 + $0x124] sm:$0xf]  ;;  %v1143_v34 = vor.u32 %v1278_v28, %v1142_v27  ;;  %v1034_v36 = vld [vmem:[#allocation3 + $0x78] sm:$0xf] }
  0x28   : > { %653 = vmatpush.bf16.msra.mxu3 %v1147_v15  ;;  %626 = vmatpush.bf16.msra.mxu1 %v1155_v23  ;;  %v1120_v35 = vld [vmem:[#allocation3 + $0x12c] sm:$0xf0]  ;;  %v1251_v37 = vld [vmem:[#allocation3 + $0x80] sm:$0xf0]  ;;  %v1130_v38 = vld [vmem:[#allocation3 + $0x138] sm:$0xf]  ;;  %v1027_v40 = vor.u32 %v1247_v30, %v1024_v31 }
  0x29   : > { %v1275_v39 = vld [vmem:[#allocation3 + $0x140] sm:$0xf0]  ;;  %v1244_v41 = vld [vmem:[#allocation3 + $0x4c] sm:$0xf]  ;;  %v1012_v42 = vld [vmem:[#allocation3 + $0x54] sm:$0xf0]  ;;  %v1035_v43 = vor.u32 %v1251_v37, %v1034_v36  ;;  %v1123_v44 = vor.u32 %v1271_v32, %v1120_v35 }
  0x2a   : > { %v1268_v45 = vld [vmem:[#allocation3 + $0x10c] sm:$0xf]  ;;  %v1131_v46 = vor.u32 %v1275_v39, %v1130_v38  ;;  %v1022_v47 = vld [vmem:[#allocation3 + $0x60] sm:$0xf]  ;;  %v1108_v49 = vld [vmem:[#allocation3 + $0x114] sm:$0xf0]  ;;  %v1015_v52 = vor.u32 %v1244_v41, %v1012_v42 }
  0x2b   : > { %641 = vmatpush.bf16.msra.mxu2 %v1039_v25  ;;  %614 = vmatpush.bf16.msra.mxu0 %v1047_v33  ;;  %v1248_v48 = vld [vmem:[#allocation3 + $0x68] sm:$0xf0]  ;;  %v1118_v50 = vld [vmem:[#allocation3 + $0x120] sm:$0xf]  ;;  %v1241_v53 = vld [vmem:[#allocation3 + $0x34] sm:$0xf]  ;;  %v1111_v56 = vor.u32 %v1268_v45, %v1108_v49 }
  0x2c   : > { %654 = vmatpush.bf16.msra.mxu3 %v1135_v29  ;;  %627 = vmatpush.bf16.msra.mxu1 %v1143_v34  ;;  %v1272_v51 = vld [vmem:[#allocation3 + $0x128] sm:$0xf0]  ;;  %v1000_v54 = vld [vmem:[#allocation3 + $0x3c] sm:$0xf0]  ;;  %v1023_v55 = vor.u32 %v1248_v48, %v1022_v47  ;;  %v1265_v57 = vld [vmem:[#allocation3 + $0xf4] sm:$0xf] }
  0x2d   : > { %v1119_v58 = vor.u32 %v1272_v51, %v1118_v50  ;;  %v1010_v59 = vld [vmem:[#allocation3 + $0x48] sm:$0xf]  ;;  %v1245_v60 = vld [vmem:[#allocation3 + $0x50] sm:$0xf0]  ;;  %v1096_v61 = vld [vmem:[#allocation3 + $0xfc] sm:$0xf0]  ;;  %v1003_v0 = vor.u32 %v1241_v53, %v1000_v54 }
  0x2e   : > { %v1106_v62 = vld [vmem:[#allocation3 + $0x108] sm:$0xf]  ;;  %v1269_v63 = vld [vmem:[#allocation3 + $0x110] sm:$0xf0]  ;;  %v1238_v1 = vld [vmem:[#allocation3 + $0x1c] sm:$0xf]  ;;  %v1011_v3 = vor.u32 %v1245_v60, %v1010_v59  ;;  %v1099_v4 = vor.u32 %v1265_v57, %v1096_v61 }
  0x2f   : > { %642 = vmatpush.bf16.msra.mxu2 %v1027_v40  ;;  %615 = vmatpush.bf16.msra.mxu0 %v1035_v43  ;;  %v988_v2 = vld [vmem:[#allocation3 + $0x24] sm:$0xf0]  ;;  %v1262_v5 = vld [vmem:[#allocation3 + $0xdc] sm:$0xf]  ;;  %v1107_v6 = vor.u32 %v1269_v63, %v1106_v62  ;;  %v998_v7 = vld [vmem:[#allocation3 + $0x30] sm:$0xf] }
  0x30   : > { %655 = vmatpush.bf16.msra.mxu3 %v1123_v44  ;;  %628 = vmatpush.bf16.msra.mxu1 %v1131_v46  ;;  %v1242_v8 = vld [vmem:[#allocation3 + $0x38] sm:$0xf0]  ;;  %v1084_v9 = vld [vmem:[#allocation3 + $0xe4] sm:$0xf0]  ;;  %v1094_v10 = vld [vmem:[#allocation3 + $0xf0] sm:$0xf]  ;;  %v991_v12 = vor.u32 %v1238_v1, %v988_v2 }
  0x31   : > { %v1266_v11 = vld [vmem:[#allocation3 + $0xf8] sm:$0xf0]  ;;  %v1235_v13 = vld [vmem:[#allocation3 + $0x4] sm:$0xf]  ;;  %v976_v14 = vld [vmem:[#allocation3 + $0xc] sm:$0xf0]  ;;  %v999_v16 = vor.u32 %v1242_v8, %v998_v7  ;;  %v1087_v17 = vor.u32 %v1262_v5, %v1084_v9 }
  0x32   : > { %v1259_v15 = vld [vmem:[#allocation3 + $0xc4] sm:$0xf]  ;;  %v1072_v18 = vld [vmem:[#allocation3 + $0xcc] sm:$0xf0]  ;;  %v1095_v19 = vor.u32 %v1266_v11, %v1094_v10  ;;  %v986_v20 = vld [vmem:[#allocation3 + $0x18] sm:$0xf]  ;;  %v979_v28 = vor.u32 %v1235_v13, %v976_v14 }
  0x33   : > { %643 = vmatpush.bf16.msra.mxu2 %v1015_v52  ;;  %616 = vmatpush.bf16.msra.mxu0 %v1023_v55  ;;  %v1239_v21 = vld [vmem:[#allocation3 + $0x20] sm:$0xf0]  ;;  %v1202_v22 = vld [vmem:[%s1738_s2 + $0x48] sm:$0xf]  ;;  %v1232_v24 = vld [vmem:[%s1738_s2 + $0x4c] sm:$0xf]  ;;  %v1075_v33 = vor.u32 %v1259_v15, %v1072_v18 }
  0x34   : > { %656 = vmatpush.bf16.msra.mxu3 %v1111_v56  ;;  %629 = vmatpush.bf16.msra.mxu1 %v1119_v58  ;;  %v1233_v23 = vld [vmem:[%s1738_s2 + $0x50] sm:$0xf0]  ;;  %v1204_v25 = vld [vmem:[%s1738_s2 + $0x54] sm:$0xf0]  ;;  %v1082_v26 = vld [vmem:[#allocation3 + $0xd8] sm:$0xf]  ;;  %v987_v31 = vor.u32 %v1239_v21, %v986_v20 }
  0x35   : > { %v1263_v27 = vld [vmem:[#allocation3 + $0xe0] sm:$0xf0]  ;;  %v273_v29 = vld [vmem:[#allocation2] sm:$0xff]  ;;  %v274_v30 = vld [vmem:[#allocation2 + $0x8] sm:$0xff]  ;;  %v1203_v34 = vor.u32 %v1233_v23, %v1202_v22  ;;  %v1207_v38 = vor.u32 %v1232_v24, %v1204_v25  ;;  %vm755_vm0 = vcmask 523264   ;;  %s1218_s20 = sshll.u32 %s1540_s25, 3 }
  0x36   : > { %v1190_v32 = vld [vmem:[%s1738_s2 + $0x30] sm:$0xf]  ;;  %v1230_v35 = vld [vmem:[%s1738_s2 + $0x38] sm:$0xf0]  ;;  %v1083_v39 = vor.u32 %v1263_v27, %v1082_v26  ;;  %v1229_v40 = vld [vmem:[%s1738_s2 + $0x34] sm:$0xf]  ;;  %v1622_v43 = vpack.c.bf16 %v273_v29, %v273_v29  ;;  %v1627_v47 = vpack.c.bf16 %v274_v30, %v274_v30  ;;  %s863_s10 = scalar_lea.hbm %s1741_s5, %s1218_s20 }
  0x37   : > { %644 = vmatpush.bf16.msra.mxu2 %v1003_v0  ;;  %617 = vmatpush.bf16.msra.mxu0 %v1011_v3  ;;  %v974_v36 = vld [vmem:[#allocation3] sm:$0xf]  ;;  %v1236_v37 = vld [vmem:[#allocation3 + $0x8] sm:$0xf0]  ;;  %v1066_v41 = vld [vmem:[#allocation3 + $0xb0] sm:$0xf]  ;;  %v1191_v51 = vor.u32 %v1230_v35, %v1190_v32 }
  0x38   : > { %657 = vmatpush.bf16.msra.mxu3 %v1099_v4  ;;  %630 = vmatpush.bf16.msra.mxu1 %v1107_v6  ;;  %v1258_v42 = vld [vmem:[#allocation3 + $0xb8] sm:$0xf0]  ;;  %v1192_v44 = vld [vmem:[%s1738_s2 + $0x3c] sm:$0xf0]  ;;  %v1070_v45 = vld [vmem:[#allocation3 + $0xc0] sm:$0xf]  ;;  %v975_v48 = vor.u32 %v1236_v37, %v974_v36 }
  0x39   : > { %v1260_v46 = vld [vmem:[#allocation3 + $0xc8] sm:$0xf0]  ;;  %v1162_v49 = vld [vmem:[#allocation3 + $0x170] sm:$0xf]  ;;  %v1282_v50 = vld [vmem:[#allocation3 + $0x178] sm:$0xf0]  ;;  %v1067_v52 = vor.u32 %v1258_v42, %v1066_v41  ;;  %v1195_v53 = vor.u32 %v1229_v40, %v1192_v44 }
  0x3a   : > { %v1071_v54 = vor.u32 %v1260_v46, %v1070_v45  ;;  %v1178_v55 = vld [vmem:[%s1738_s2 + $0x18] sm:$0xf]  ;;  %v1227_v56 = vld [vmem:[%s1738_s2 + $0x20] sm:$0xf0]  ;;  %v1226_v57 = vld [vmem:[%s1738_s2 + $0x1c] sm:$0xf]  ;;  %v1163_v59 = vor.u32 %v1282_v50, %v1162_v49 }
  0x3b   : > { %645 = vmatpush.bf16.msra.mxu2 %v991_v12  ;;  %618 = vmatpush.bf16.msra.mxu0 %v999_v16  ;;  %v1180_v58 = vld [vmem:[%s1738_s2 + $0x24] sm:$0xf0]  ;;  %v1255_v61 = vld [vmem:[#allocation3 + $0xa0] sm:$0xf0]  ;;  %v1179_v0 = vor.u32 %v1227_v56, %v1178_v55  ;;  %v1166_v1 = vld [vmem:[%s1738_s2] sm:$0xf] }
  0x3c   : > { %658 = vmatpush.bf16.msra.mxu3 %v1087_v17  ;;  %631 = vmatpush.bf16.msra.mxu1 %v1095_v19  ;;  %v1054_v60 = vld [vmem:[#allocation3 + $0x98] sm:$0xf]  ;;  %v1279_v63 = vld [vmem:[#allocation3 + $0x160] sm:$0xf0]  ;;  %v1183_v2 = vor.u32 %v1226_v57, %v1180_v58  ;;  %v1224_v3 = vld [vmem:[%s1738_s2 + $0x8] sm:$0xf0] }
  0x3d   : > { %v1150_v62 = vld [vmem:[#allocation3 + $0x158] sm:$0xf]  ;;  %v1223_v4 = vld [vmem:[%s1738_s2 + $0x4] sm:$0xf]  ;;  %v1168_v5 = vld [vmem:[%s1738_s2 + $0xc] sm:$0xf0]  ;;  %v1055_v6 = vor.u32 %v1255_v61, %v1054_v60  ;;  %v1167_v14 = vor.u32 %v1224_v3, %v1166_v1 }
  0x3e   : > { %v1151_v7 = vor.u32 %v1279_v63, %v1150_v62  ;;  %v1042_v8 = vld [vmem:[#allocation3 + $0x80] sm:$0xf]  ;;  %v1252_v9 = vld [vmem:[#allocation3 + $0x88] sm:$0xf0]  ;;  %v1171_v15 = vor.u32 %v1223_v4, %v1168_v5  ;;  %v1030_v19 = vld [vmem:[#allocation3 + $0x68] sm:$0xf] }
  0x3f   : > { %646 = vmatpush.bf16.msra.mxu2 %v979_v28  ;;  %619 = vmatpush.bf16.msra.mxu0 %v987_v31  ;;  %v1138_v10 = vld [vmem:[#allocation3 + $0x140] sm:$0xf]  ;;  %v1276_v11 = vld [vmem:[#allocation3 + $0x148] sm:$0xf0]  ;;  %v1043_v16 = vor.u32 %v1252_v9, %v1042_v8  ;;  %v1249_v20 = vld [vmem:[#allocation3 + $0x70] sm:$0xf0] }
  0x40   : > { %659 = vmatpush.bf16.msra.mxu3 %v1075_v33  ;;  %632 = vmatpush.bf16.msra.mxu1 %v1083_v39  ;;  %v1210_v12 = vld [vmem:[%s1738_s2 + $0x50] sm:$0xf]  ;;  %v1234_v13 = vld [vmem:[%s1738_s2 + $0x58] sm:$0xf0]  ;;  %v1139_v17 = vor.u32 %v1276_v11, %v1138_v10  ;;  %v1126_v21 = vld [vmem:[#allocation3 + $0x128] sm:$0xf]  ;;  %v1031_v25 = vor.u32 %v1249_v20, %v1030_v19 }
  0x41   : > { %v1211_v18 = vor.u32 %v1234_v13, %v1210_v12  ;;  %v1273_v22 = vld [vmem:[#allocation3 + $0x130] sm:$0xf0]  ;;  %v1198_v23 = vld [vmem:[%s1738_s2 + $0x38] sm:$0xf]  ;;  %v1018_v27 = vld [vmem:[#allocation3 + $0x50] sm:$0xf] }
  0x42   : > { %647 = vmatmul.bf16.vlgmr.msra.gmra.mxu2 %v1622_v43  ;;  %v1231_v24 = vld [vmem:[%s1738_s2 + $0x40] sm:$0xf0]  ;;  %v1127_v26 = vor.u32 %v1273_v22, %v1126_v21  ;;  %v1246_v28 = vld [vmem:[#allocation3 + $0x58] sm:$0xf0]  ;;  %v272_v29 = vld [vmem:[%s1590_s28] sm:$0xf] }
  0x43   : > { %763 = vmatpush.bf16.msrb.mxu2 %v1203_v34  ;;  %660 = vmatmul.bf16.vlgmr.msra.gmra.mxu3 %v1627_v47  ;;  %v1199_v30 = vor.u32 %v1231_v24, %v1198_v23  ;;  %v1114_v31 = vld [vmem:[#allocation3 + $0x110] sm:$0xf]  ;;  %v1270_v32 = vld [vmem:[#allocation3 + $0x118] sm:$0xf0]  ;;  %v1019_v35 = vor.u32 %v1246_v28, %v1018_v27  ;;  %v1006_v37 = vld [vmem:[#allocation3 + $0x38] sm:$0xf] }
  0x44   : > { %776 = vmatpush.bf16.msrb.mxu3 %v1207_v38  ;;  %620 = vmatpush.bf16.msra.mxu0 %v975_v48  ;;  %v1186_v33 = vld [vmem:[%s1738_s2 + $0x20] sm:$0xf]  ;;  %v1228_v34 = vld [vmem:[%s1738_s2 + $0x28] sm:$0xf0]  ;;  %v1115_v36 = vor.u32 %v1270_v32, %v1114_v31  ;;  %v1243_v38 = vld [vmem:[#allocation3 + $0x40] sm:$0xf0] }
  0x45   : > { %633 = vmatpush.bf16.msra.mxu1 %v1071_v54  ;;  %v1187_v39 = vor.u32 %v1228_v34, %v1186_v33  ;;  %v1102_v40 = vld [vmem:[#allocation3 + $0xf8] sm:$0xf]  ;;  %v1267_v41 = vld [vmem:[#allocation3 + $0x100] sm:$0xf0]  ;;  %v1007_v45 = vor.u32 %v1243_v38, %v1006_v37  ;;  %v994_v48 = vld [vmem:[#allocation3 + $0x20] sm:$0xf] }
  0x46   : > { %v1174_v42 = vld [vmem:[%s1738_s2 + $0x8] sm:$0xf]  ;;  %v1225_v44 = vld [vmem:[%s1738_s2 + $0x10] sm:$0xf0]  ;;  %v1103_v46 = vor.u32 %v1267_v41, %v1102_v40  ;;  %v1240_v49 = vld [vmem:[#allocation3 + $0x28] sm:$0xf0] }
  0x47   : > { %764 = vmatpush.bf16.msrb.mxu2 %v1191_v51  ;;  %621 = vmatmul.bf16.vlgmr.msra.gmra.mxu0 %v1622_v43  ;;  %v1175_v50 = vor.u32 %v1225_v44, %v1174_v42  ;;  %v1090_v51 = vld [vmem:[#allocation3 + $0xe0] sm:$0xf]  ;;  %v982_v55 = vld [vmem:[#allocation3 + $0x8] sm:$0xf]  ;;  %v1237_v56 = vld [vmem:[#allocation3 + $0x10] sm:$0xf0] }
  0x48   : > { %665 = vmatpush.bf16.msrb.mxu0 %v1067_v52  ;;  %777 = vmatpush.bf16.msrb.mxu3 %v1195_v53  ;;  %v1264_v52 = vld [vmem:[#allocation3 + $0xe8] sm:$0xf0]  ;;  %v995_v53 = vor.u32 %v1240_v49, %v994_v48  ;;  %v1078_v57 = vld [vmem:[#allocation3 + $0xc8] sm:$0xf]  ;;  %v1261_v58 = vld [vmem:[#allocation3 + $0xd0] sm:$0xf0] }
  0x49   : > { %678 = vmatpush.bf16.msrb.mxu1 %v1163_v59  ;;  %v1091_v54 = vor.u32 %v1264_v52, %v1090_v51  ;;  %v983_v59 = vor.u32 %v1237_v56, %v982_v55  ;;  %v1079_v60 = vor.u32 %v1261_v58, %v1078_v57  ;;  %v798_v5 = vld [vmem:[%s1740_s4] sm:$0x7]  ;;  %s865_s11 = sshll.u32 %s256_s29, 4  ;;  %s867_s12 = sshll.u32 %s863_s10, 4  ;;  %s866_s11 = int_to_ptr.vmem [resolvable:$true] %s865_s11  ;;  %s868_s12 = int_to_ptr.hbm [resolvable:$true] %s867_s12 }
  0x4a   : > { %634 = vmatmul.bf16.vlgmr.msra.gmra.mxu1 %v1627_v47  ;;  %s853_s28 = scalar_lea.sflag [#allocation5], %s254_s16  ;;  %s1394_s13 = sshra.s32 %s868_s12, 4  ;;  %s1395_s13 = int_to_ptr.hbm [resolvable:$true] %s1394_s13 }
  0x4b   : > { %765 = vmatpush.bf16.msrb.mxu2 %v1179_v0  ;;  %s1396_s14 = scalar_lea.hbm %s1395_s13, 8  ;;  %s1400_s19 = scalar_lea.hbm %s1741_s5, 128 }
  0x4c   : > { %778 = vmatpush.bf16.msrb.mxu3 %v1183_v2  ;;  %666 = vmatpush.bf16.msrb.mxu0 %v1055_v6  ;;  %p1397_p1 = scmp.ne.s32.totalorder %s1395_s13, %s1396_s14  ;;  %p1401_p7 = scmp.lt.s32.totalorder %s1395_s13, %s1741_s5 }
  0x4d   : > { %679 = vmatpush.bf16.msrb.mxu1 %v1151_v7  ;;  %v800_v7 = vperm.slane %v798_v5, 0  ;;  %p1402_p8 = scmp.lt.s32.totalorder %s1400_s19, %s1396_s14 }
  0x4e   : > { %p1398_p3 = pnand %p1397_p1, %p1559_p5 }
  0x4f   : > { %766 = vmatpush.bf16.msrb.mxu2 %v1167_v14  ;;  %p1403_p9 = por %p1402_p8, %p1401_p7 }
  0x50   : > { %779 = vmatpush.bf16.msrb.mxu3 %v1171_v15  ;;  %667 = vmatpush.bf16.msrb.mxu0 %v1043_v16  ;;  %p1399_p4 = pneg %p1398_p3 }
  0x51   : > { %680 = vmatpush.bf16.msrb.mxu1 %v1139_v17 }
  0x52   : > { %1212 = vmatmul.msk.bf16.vlgmr.msrb.gmra.mxu2 %vm755_vm0, %v272_v29  ;;  %p1404_p10 = pnand %p1403_p9, %p1399_p4 }
  0x53   : > { %789 = vmatpush.bf16.msra.mxu2 %v1211_v18  ;;  %1213 = vmatmul.msk.bf16.vlgmr.msrb.gmra.mxu3 %vm755_vm0, %v272_v29 }
  0x54   : > { %668 = vmatpush.bf16.msrb.mxu0 %v1031_v25  ;;  %v802_v25 = vperm.slane %v798_v5, 2 }
  0x55   : > { %681 = vmatpush.bf16.msrb.mxu1 %v1127_v26 }
  0x57   : > { %790 = vmatpush.bf16.msra.mxu2 %v1199_v30 }
  0x58   : > { %669 = vmatpush.bf16.msrb.mxu0 %v1019_v35 }
  0x59   : > { %682 = vmatpush.bf16.msrb.mxu1 %v1115_v36 }
  0x5b   : > { %791 = vmatpush.bf16.msra.mxu2 %v1187_v39 }
  0x5c   : > { %670 = vmatpush.bf16.msrb.mxu0 %v1007_v45 }
  0x5d   : > { %683 = vmatpush.bf16.msrb.mxu1 %v1103_v46 }
  0x5f   : > { %792 = vmatpush.bf16.msra.mxu2 %v1175_v50 }
  0x60   : > { %671 = vmatpush.bf16.msrb.mxu0 %v995_v53 }
  0x61   : > { %684 = vmatpush.bf16.msrb.mxu1 %v1091_v54 }
  0x62   : > { %1214 = vmatmul.msk.bf16.vlgmr.msra.gmra.mxu2 %vm755_vm0, %v272_v29 }
  0x64   : > { %672 = vmatpush.bf16.msrb.mxu0 %v983_v59 }
  0x65   : > { %685 = vmatpush.bf16.msrb.mxu1 %v1079_v60 }
  0x67   : > { %673 = vmatmul.bf16.vlgmr.msrb.gmra.mxu0 %v1622_v43  ;;  %v801_v43 = vperm.slane %v798_v5, 1 }
  0x68   : > { %686 = vmatmul.bf16.vlgmr.msrb.gmra.mxu1 %v1627_v47 }
  0xc4   : > { %v622_v61 = vpop.f32.mrf.mxu0 }
  0xc5   : > { %v648_v62 = vpop.f32.mrf.mxu2 }
  0xc6   : > { %v661_v0 = vpop.f32.mrf.mxu3 }
  0xc7   : > { %v635_v63 = vpop.f32.mrf.mxu1  ;;  %v662_v8 = vadd.f32 %v661_v0, %v648_v62 }
  0xc8   : > { %v636_v6 = vadd.f32 %v635_v63, %v622_v61 }
  0xcc   : > { %v624_v1 = vpop.f32.mrf.mxu0 }
  0xcd   : > { %v650_v2 = vpop.f32.mrf.mxu2 }
  0xce   : > { %v663_v4 = vpop.f32.mrf.mxu3 }
  0xcf   : > { %v637_v3 = vpop.f32.mrf.mxu1 }
  0xd5   : > { %v768_v9 = vpop.f32.mrf.mxu2 }
  0xd6   : > { %v769_v10 = vadd.f32 %v768_v9, %v636_v6  ;;  %v781_v47 = vpop.f32.mrf.mxu3 }
  0xd7   : > { %v782_v11 = vadd.f32 %v781_v47, %v662_v8 }
  0xd8   : > { %v806_v12 = vadd.f32 %v800_v7, %v769_v10 }
  0xd9   : > { %v807_v13 = vadd.f32 %v801_v43, %v782_v11 }
  0xda   : > { %v1215_v14 = vmul.f32 -1.442695, %v806_v12 }
  0xdb   : > { %v1216_v15 = vmul.f32 -1.442695, %v807_v13 }
  0xdc   : > { %1342 = vpow2.f32 %v1215_v14 }
  0xdd   : > { %1344 = vpow2.f32 %v1216_v15  ;;  %v770_v16 = vpop.f32.mrf.mxu2 }
  0xde   : > { %v783_v17 = vpop.f32.mrf.mxu3 }
  0xe2   : > { %v1343_v19 = vpop.eup %1342 }
  0xe3   : > { %v1345_v21 = vpop.eup %1344  ;;  %v815_v22 = vadd.f32 1.0, %v1343_v19 }
  0xe4   : > { %v674_v18 = vpop.f32.mrf.mxu0  ;;  %v816_v24 = vadd.f32 1.0, %v1345_v21 }
  0xe5   : > { %v687_v20 = vpop.f32.mrf.mxu1  ;;  %1346 = vrcp.f32 %v815_v22  ;;  %v794_v26 = vpop.f32.mrf.mxu2 }
  0xe6   : > { %v688_v23 = vadd.f32 %v687_v20, %v674_v18  ;;  %1348 = vrcp.f32 %v816_v24 }
  0xe8   : > { %v795_v27 = vadd.f32 %v794_v26, %v688_v23 }
  0xea   : > { %v808_v28 = vadd.f32 %v802_v25, %v795_v27 }
  0xeb   : > { %v1347_v31 = vpop.eup %1346 }
  0xec   : > { %v676_v29 = vpop.f32.mrf.mxu0  ;;  %849 = vst [vmem:[%s256_s29] sm:$0xff] %v808_v28 }
  0xed   : > { %v689_v30 = vpop.f32.mrf.mxu1 }
  0xee   : > { %1407 = shalt.err (!%p1404_p10)
}
  0xef   : > { %1287 = dma.vmem_to_hbm [thread:$0]  (%p1559_p5), %s866_s11, 128, %s868_s12, %s853_s28   ;;  %v1349_v32 = vpop.eup %1348  ;;  %v818_v33 = vmul.f32 %v1347_v31, %v815_v22  ;;  %v796_v34 = vpop.f32.mrf.mxu2  ;;  %v828_v37 = vand.u32 2147483648, %v815_v22  ;;  %vm823_vm1 = vweird.f32 %v1347_v31  ;;  %v826_v40 = vand.u32 2147483647, %v815_v22 }
  0xf0   : > { %v833_v35 = vmul.f32 %v1349_v32, %v816_v24  ;;  %v843_v41 = vand.u32 2147483648, %v816_v24  ;;  %vm838_vm2 = vweird.f32 %v1349_v32  ;;  %v841_v44 = vand.u32 2147483647, %v816_v24  ;;  %s1483_s7 = smov [#allocation7]   ;;  %s879_s9 = sshll.u32 %s1742_s6, 4  ;;  %s880_s9 = int_to_ptr.hbm [resolvable:$true] %s879_s9 }
  0xf1   : > { %v819_v36 = vsub.f32 1.0, %v818_v33  ;;  %vm822_vm3 = vweird.f32 %v815_v22  ;;  %v829_v46 = vor.u32 1.1754944e-38, %v828_v37  ;;  %vm837_vm5 = vweird.f32 %v816_v24  ;;  %s877_s16 = sshll.u32 %s1483_s7, 4  ;;  %s878_s16 = int_to_ptr.vmem [resolvable:$true] %s877_s16 }
  0xf2   : > { %v834_v38 = vsub.f32 1.0, %v833_v35  ;;  %vm824_vm4 = vmor %vm822_vm3, %vm823_vm1  ;;  %vm827_vm6 = vcmp.eq.f32.partialorder %v826_v40, 8.507059e+37  ;;  %v844_v50 = vor.u32 1.1754944e-38, %v843_v41  ;;  %vm842_vm8 = vcmp.eq.f32.partialorder %v841_v44, 8.507059e+37 }
  0xf3   : > { %v820_v39 = vmul.f32 %v1347_v31, %v819_v36  ;;  %vm839_vm7 = vmor %vm837_vm5, %vm838_vm2 }
  0xf4   : > { %v835_v42 = vmul.f32 %v1349_v32, %v834_v38 }
  0xf5   : > { %v821_v45 = vadd.f32 %v1347_v31, %v820_v39 }
  0xf6   : > { %v836_v48 = vadd.f32 %v1349_v32, %v835_v42 }
  0xf7   : > { %v825_v49 = vsel %vm824_vm4, %v1347_v31, %v821_v45 }
  0xf8   : > { %v830_v51 = vsel %vm827_vm6, %v829_v46, %v825_v49  ;;  %v840_v52 = vsel %vm839_vm7, %v1349_v32, %v836_v48 }
  0xf9   : > { %v845_v53 = vsel %vm842_vm8, %v844_v50, %v840_v52  ;;  %847 = vst [vmem:[#allocation2] sm:$0xff] %v830_v51 }
  0xfa   : > { %848 = vst [vmem:[#allocation2 + $0x8] sm:$0xff] %v845_v53 }
  0xfb   : > { %850 = vst [vmem:[#allocation7] sm:$0xff] %v830_v51 }
  0xfc   : > { %851 = vst [vmem:[#allocation7 + $0x8] sm:$0xff] %v845_v53 }
  0xfd   : > { %1289 = dma.vmem_to_hbm [thread:$0]  (%p150_p2), %s878_s16, 256, %s880_s9, [#allocation8]  }
  0xfe   : > { %1457 = dma.done.wait (%p150_p2), [#allocation8], 256  }
  0xff   : > { %1459 = vsyncadd (%p150_p2), [#allocation8], 4294967040 }
 0x100 PF: > { %p1305_p5 = scmp.ge.s32.totalorder %s1478_s24, 2  ;;  %s896_s10 = sand.u32 1, %s1466_s21  }
 0x101   : > { %s897_s11 = scalar_lea.sflag [#allocation5], %s896_s10 }
 0x102   : > { %p1298_p11 = pnand %p1305_p5, %p1563_p6 }
 0x104   : > { %p1299_p12 = pneg %p1298_p11 }
 0x106   : > { %1461 = dma.done.wait (%p1299_p12), %s897_s11, 128  }
 0x107   : > { %1463 = vsyncadd (%p1299_p12), %s897_s11, 4294967168  ;;  %p19_p13 = scmp.ge.s32.totalorder %s1544_s27, 18   ;;  %s1745_s21 = smov %s1470_s22 }
 0x108   : > { %s1746_s22 = smov %s1474_s23  ;;  %s1747_s23 = smov %s1555_s30 }
 0x109   : > { %s1748_s24 = smov %s1544_s27  ;;  %21 = sbr.rel (!%p19_p13) target bundleno = 5 (0x5), region = 92 }
 0x10e   :  { %903 = vsyncpa [#allocation4], 1 }
 0x10f   :  { %905 = vsyncpa [#allocation4 + $0x1], 1 }
 0x110   :  { %906 = vsyncpa [#allocation5], 1 }
 0x111   :  { %908 = vsyncpa [#allocation5 + $0x1], 1 }
 0x112   :  { %909 = vsyncpa [#allocation8], 1 }

</bundles_post_ra>
